<compile_context>
chip_gen: v6e
topology: v6e:2x2x1
jax: 0.10.0
libtpu: 0.0.40
codegen_flags: <defaults>
</compile_context>

<pallas_src>
import math

import jax
import jax.numpy as jnp
import numpy as np
from jax.experimental import pallas as pl
from jax.experimental.pallas import tpu as pltpu


def _bow_kernel(feat_ref,      # VMEM (M, 1+T)  [char_id | tags], compute dtype
                w1_ref,        # VMEM (V+T, E)  [embedding ; tag_weights*tag_emb]
                conv_w_ref,    # VMEM (3, E, E) conv taps, (k, in, out)
                conv_b_ref,    # VMEM (1, E)    f32
                out_ref):      # VMEM (E, TB)   f32, transposed (lane-dense)
    M, C = feat_ref.shape
    T = C - 1
    VT, E = w1_ref.shape
    V = VT - T
    TB = out_ref.shape[1]
    L = M // TB

    feat = feat_ref[...]                                   # (M, 1+T)
    chars = feat[:, 0:1].astype(jnp.int32)                 # (M, 1); -1 == masked
    vocab = jax.lax.broadcasted_iota(jnp.int32, (M, V), 1)
    onehot = (vocab == chars).astype(feat.dtype)           # (M, V), exact in bf16
    operand = jnp.concatenate([onehot, feat[:, 1:]], axis=-1)   # (M, V+T)

    # Fused embedding gather + tag projection: one MXU matmul, f32 accumulate.
    h = jnp.dot(operand, w1_ref[...],
                preferred_element_type=jnp.float32)        # (M, E) f32

    # Conv1d(E, E, kernel=3, padding=1) == h_prev@W0 + h@W1 + h_next@W2.
    # Shifts are sublane rolls of the flat (b*L + t) slab; rows at per-example
    # boundaries (t == 0 / t == L-1) are zeroed, which implements the conv
    # zero padding and kills roll wrap-around / cross-example bleed.
    t = jax.lax.broadcasted_iota(jnp.int32, (M, 1), 0) & (L - 1)   # pos in example
    h_prev = jnp.where(t == 0,     0.0, pltpu.roll(h, shift=1,     axis=0))
    h_next = jnp.where(t == L - 1, 0.0, pltpu.roll(h, shift=M - 1, axis=0))

    cdt = conv_w_ref.dtype
    y = jnp.dot(h_prev.astype(cdt), conv_w_ref[0], preferred_element_type=jnp.float32)
    y = y + jnp.dot(h.astype(cdt),      conv_w_ref[1], preferred_element_type=jnp.float32)
    y = y + jnp.dot(h_next.astype(cdt), conv_w_ref[2], preferred_element_type=jnp.float32)
    y = jnp.maximum(y + conv_b_ref[...], 0.0)              # bias + relu, (M, E) f32

    # Per-example max over the L sequence positions, then store transposed so
    # the output block is lane-dense (unmasked full-lane stores).
    res = jnp.max(y.reshape(TB, L, E), axis=1)             # (TB, E)
    out_ref[...] = res.T.astype(out_ref.dtype)             # (E, TB)


def bow_embedding_forward(sizes, char_enc, tag_enc, params, *,
                          max_block_b=128, use_bf16=False):
    assert max_block_b % 128 == 0, "max_block_b must be a multiple of 128"
    emb_table = params["embedding"].astype(jnp.float32)        # (V, E)
    tag_weights = params["tag_weights"].astype(jnp.float32)    # (1, T)
    tag_emb = params["tag_emb"].astype(jnp.float32)            # (T, E)
    conv_w = params["conv_w"].astype(jnp.float32)              # (E_out, E_in, 3)
    conv_b = params["conv_b"].astype(jnp.float32)              # (E,)

    B, L = char_enc.shape
    T = tag_enc.shape[-1]
    V, E = emb_table.shape
    assert L >= 8 and (L & (L - 1)) == 0, "kernel assumes L is a power of two >= 8"

    cdtype = jnp.bfloat16 if use_bf16 else jnp.float32

    # ---- fold / stack weights once, outside the kernel ----------------------
    # [one-hot(char) | tags] @ [embedding ; tag_weights * tag_emb]
    w1 = jnp.concatenate([emb_table, tag_weights.reshape(T, 1) * tag_emb],
                         axis=0).astype(cdtype)                  # (V+T, E)
    # Conv taps as (k, in, out) so tap k multiplies x[t-1+k].
    conv_w_k = jnp.transpose(conv_w, (2, 1, 0)).astype(cdtype)   # (3, E, E)
    conv_b2 = conv_b.reshape(1, E)                               # f32

    # ---- batch tiling --------------------------------------------------------
    if B > max_block_b:
        tb = max_block_b           # multiple of 128 -> lane-dense output blocks
    else:
        tb = -(-B // 8) * 8        # single grid step, padded to a sublane multiple
    b_pad = -(-B // tb) * tb
    nblk = b_pad // tb
    M = tb * L

    # ---- pack ALL per-row data into one (rows, 1+T) slab ---------------------
    sizes_i = sizes.astype(jnp.int32)
    char_i = char_enc.astype(jnp.int32)
    tag_f = tag_enc.astype(jnp.float32)
    pos = jnp.arange(L, dtype=jnp.int32)[None, :]
    # Length mask folded into the char ids: -1 never matches the one-hot iota,
    # so masked positions contribute zero char embedding (tags stay unmasked,
    # exactly like the PyTorch module).
    char_m = jnp.where(pos < sizes_i[:, None], char_i, -1)
    if b_pad != B:
        pad = b_pad - B
        char_m = jnp.pad(char_m, ((0, pad), (0, 0)), constant_values=-1)
        tag_f = jnp.pad(tag_f, ((0, pad), (0, 0), (0, 0)))
    feat = jnp.concatenate(
        [char_m.reshape(b_pad * L, 1).astype(cdtype),
         tag_f.reshape(b_pad * L, T).astype(cdtype)], axis=-1)   # (b_pad*L, 1+T)

    out_t = pl.pallas_call(
        _bow_kernel,
        out_shape=jax.ShapeDtypeStruct((E, b_pad), jnp.float32),
        grid=(nblk,),
        in_specs=[
            pl.BlockSpec((M, 1 + T), lambda b: (b, 0)),      # packed per-row slab
            pl.BlockSpec((V + T, E), lambda b: (0, 0)),      # fused gather/tag table
            pl.BlockSpec((3, E, E), lambda b: (0, 0, 0)),    # conv taps
            pl.BlockSpec((1, E), lambda b: (0, 0)),          # conv bias
        ],
        out_specs=pl.BlockSpec((E, tb), lambda b: (0, b)),   # lane-dense, transposed
        compiler_params=pltpu.CompilerParams(
            dimension_semantics=("parallel",)),
    )(feat, w1, conv_w_k, conv_b2)

    return out_t.T[:B]   # (B, E)


def bow_embedding_reference(sizes, char_enc, tag_enc, params):
    """Pure-JAX reference mirroring the PyTorch forward (eval mode)."""
    char_emb = params["embedding"][char_enc]
    mask = (jnp.arange(char_enc.shape[1])[None, :] < sizes[:, None]).astype(jnp.float32)
    char_emb = char_emb * mask[:, :, None]
    te = (params["tag_weights"] * tag_enc.astype(jnp.float32)) @ params["tag_emb"]
    h = char_emb + te                                   # (B, L, E)
    x = jnp.transpose(h, (0, 2, 1))                     # (B, E, L)
    y = jax.lax.conv_general_dilated(
        x, params["conv_w"], window_strides=(1,), padding=((1, 1),),
        dimension_numbers=("NCH", "OIH", "NCH"))
    y = y + params["conv_b"][None, :, None]
    y = jnp.maximum(y, 0.0)
    y = jnp.transpose(y, (0, 2, 1))                     # (B, L, E)
    return jnp.max(y, axis=1)                           # (B, E)


def _prefer_bf16():
    """bf16 MXU operands pay off on v6e/v7x; keep f32 on v4/v5 (no bf16 VPU)."""
    try:
        kind = jax.devices()[0].device_kind.lower()
    except Exception:
        return False
    return any(tag in kind for tag in ("v6", "v7", "7x"))


if __name__ == "__main__":
    # config: input_size=64, emb_size=32, n_tags=8, dropout=0.1 (identity at eval)
    B, L, V, E, T = 2, 16, 64, 32, 8

    key = jax.random.PRNGKey(0)
    k_emb, k_tage, k_cw, k_cb, k_chars, k_tags = jax.random.split(key, 6)

    params = {
        "embedding": jax.random.normal(k_emb, (V, E), jnp.float32) * 0.1,
        "tag_weights": jnp.ones((1, T), jnp.float32) / T,
        "tag_emb": jax.random.normal(k_tage, (T, E), jnp.float32),
        "conv_w": jax.random.normal(k_cw, (E, E, 3), jnp.float32) / math.sqrt(3 * E),
        "conv_b": jax.random.normal(k_cb, (E,), jnp.float32) * 0.01,
    }

    char_enc = jax.random.randint(k_chars, (B, L), 0, V, jnp.int32)
    tag_enc = jax.random.bernoulli(k_tags, 0.3, (B, L, T)).astype(jnp.float32)
    sizes = jnp.array([9, 16], dtype=jnp.int32)

    use_bf16 = _prefer_bf16()
    out = jax.block_until_ready(
        bow_embedding_forward(sizes, char_enc, tag_enc, params, use_bf16=use_bf16))
    ref = jax.block_until_ready(
        bow_embedding_reference(sizes, char_enc, tag_enc, params))

    tol = 2e-2 if use_bf16 else 1e-4
    np.testing.assert_allclose(np.asarray(out), np.asarray(ref), rtol=tol, atol=tol)

    print("KERNEL_OK")
</pallas_src>

<mosaic_0001>
module attributes {stable_mosaic.version = 11 : i64} {
  func.func @_bow_kernel(%arg0: i32, %arg1: memref<128x9xf32, #tpu.memory_space<vmem>>, %arg2: memref<72x32xf32, #tpu.memory_space<vmem>>, %arg3: memref<3x32x32xf32, #tpu.memory_space<vmem>>, %arg4: memref<1x32xf32, #tpu.memory_space<vmem>>, %arg5: memref<32x8xf32, #tpu.memory_space<vmem>>) attributes {dimension_semantics = [#tpu.dimension_semantics<parallel>], iteration_bounds = array<i64: 1>, scalar_prefetch = 0 : i64, scratch_operands = 0 : i64, tpu.core_type = #tpu.core_type<tc>, window_params = [{transform_indices = @transform_0, window_bounds = array<i64: 128, 9>}, {pipeline_mode = #tpu.pipeline_mode<synchronous>, transform_indices = @transform_1, window_bounds = array<i64: 72, 32>}, {pipeline_mode = #tpu.pipeline_mode<synchronous>, transform_indices = @transform_2, window_bounds = array<i64: 3, 32, 32>}, {pipeline_mode = #tpu.pipeline_mode<synchronous>, transform_indices = @transform_3, window_bounds = array<i64: 1, 32>}, {transform_indices = @transform_4, window_bounds = array<i64: 32, 8>}]} {
    %c0 = arith.constant 0 : index
    %c0_0 = arith.constant 0 : index
    %0 = vector.load %arg1[%c0, %c0_0] : memref<128x9xf32, #tpu.memory_space<vmem>>, vector<128x9xf32>
    %1 = vector.extract_strided_slice %0 {offsets = [0, 0], sizes = [128, 1], strides = [1, 1]} : vector<128x9xf32> to vector<128x1xf32>
    %2 = arith.fptosi %1 : vector<128x1xf32> to vector<128x1xi32>
    %3 = tpu.iota {dimensions = array<i32: 1>} : vector<128x64xi32>
    %4 = vector.broadcast %2 : vector<128x1xi32> to vector<128x64xi32>
    %5 = arith.cmpi eq, %3, %4 : vector<128x64xi32>
    %6 = arith.extui %5 : vector<128x64xi1> to vector<128x64xi32>
    %7 = arith.sitofp %6 : vector<128x64xi32> to vector<128x64xf32>
    %8 = vector.extract_strided_slice %0 {offsets = [0, 1], sizes = [128, 8], strides = [1, 1]} : vector<128x9xf32> to vector<128x8xf32>
    %9 = tpu.concatenate %7, %8 in 1 : vector<128x64xf32>, vector<128x8xf32> -> vector<128x72xf32>
    %c0_1 = arith.constant 0 : index
    %c0_2 = arith.constant 0 : index
    %10 = vector.load %arg2[%c0_1, %c0_2] : memref<72x32xf32, #tpu.memory_space<vmem>>, vector<72x32xf32>
    %cst = arith.constant dense<0.000000e+00> : vector<128x32xf32>
    %11 = tpu.matmul %9, %10, %cst {dimension_numbers = #tpu.dot_dimension_numbers<[1], [0], [0], [1], [0, 0, 1, 1], [], []>} : vector<128x72xf32>, vector<72x32xf32>, vector<128x32xf32> -> vector<128x32xf32>
    %12 = tpu.iota {dimensions = array<i32: 0>} : vector<128x1xi32>
    %c15_i32 = arith.constant 15 : i32
    %13 = vector.broadcast %c15_i32 : i32 to vector<128x1xi32>
    %14 = arith.andi %12, %13 : vector<128x1xi32>
    %c0_i32 = arith.constant 0 : i32
    %15 = vector.broadcast %c0_i32 : i32 to vector<128x1xi32>
    %16 = arith.cmpi eq, %14, %15 : vector<128x1xi32>
    %c1_i32 = arith.constant 1 : i32
    %17 = tpu.dynamic_rotate %11 by %c1_i32 dim 0 : vector<128x32xf32>, i32 -> vector<128x32xf32>
    %cst_3 = arith.constant 0.000000e+00 : f32
    %18 = vector.shape_cast %16 : vector<128x1xi1> to vector<128x1xi1>
    %19 = vector.broadcast %18 : vector<128x1xi1> to vector<128x32xi1>
    %20 = vector.broadcast %cst_3 : f32 to vector<128x32xf32>
    %21 = arith.select %19, %20, %17 : vector<128x32xi1>, vector<128x32xf32>
    %c15_i32_4 = arith.constant 15 : i32
    %22 = vector.broadcast %c15_i32_4 : i32 to vector<128x1xi32>
    %23 = arith.cmpi eq, %14, %22 : vector<128x1xi32>
    %c127_i32 = arith.constant 127 : i32
    %24 = tpu.dynamic_rotate %11 by %c127_i32 dim 0 : vector<128x32xf32>, i32 -> vector<128x32xf32>
    %cst_5 = arith.constant 0.000000e+00 : f32
    %25 = vector.shape_cast %23 : vector<128x1xi1> to vector<128x1xi1>
    %26 = vector.broadcast %25 : vector<128x1xi1> to vector<128x32xi1>
    %27 = vector.broadcast %cst_5 : f32 to vector<128x32xf32>
    %28 = arith.select %26, %27, %24 : vector<128x32xi1>, vector<128x32xf32>
    %c0_6 = arith.constant 0 : index
    %c0_7 = arith.constant 0 : index
    %c0_8 = arith.constant 0 : index
    %29 = vector.load %arg3[%c0_6, %c0_7, %c0_8] : memref<3x32x32xf32, #tpu.memory_space<vmem>>, vector<1x32x32xf32>
    %30 = vector.shape_cast %29 : vector<1x32x32xf32> to vector<32x32xf32>
    %cst_9 = arith.constant dense<0.000000e+00> : vector<128x32xf32>
    %31 = tpu.matmul %21, %30, %cst_9 {dimension_numbers = #tpu.dot_dimension_numbers<[1], [0], [0], [1], [0, 0, 1, 1], [], []>} : vector<128x32xf32>, vector<32x32xf32>, vector<128x32xf32> -> vector<128x32xf32>
    %c1 = arith.constant 1 : index
    %c0_10 = arith.constant 0 : index
    %c0_11 = arith.constant 0 : index
    %32 = vector.load %arg3[%c1, %c0_10, %c0_11] : memref<3x32x32xf32, #tpu.memory_space<vmem>>, vector<1x32x32xf32>
    %33 = vector.shape_cast %32 : vector<1x32x32xf32> to vector<32x32xf32>
    %cst_12 = arith.constant dense<0.000000e+00> : vector<128x32xf32>
    %34 = tpu.matmul %11, %33, %cst_12 {dimension_numbers = #tpu.dot_dimension_numbers<[1], [0], [0], [1], [0, 0, 1, 1], [], []>} : vector<128x32xf32>, vector<32x32xf32>, vector<128x32xf32> -> vector<128x32xf32>
    %35 = arith.addf %31, %34 : vector<128x32xf32>
    %c2 = arith.constant 2 : index
    %c0_13 = arith.constant 0 : index
    %c0_14 = arith.constant 0 : index
    %36 = vector.load %arg3[%c2, %c0_13, %c0_14] : memref<3x32x32xf32, #tpu.memory_space<vmem>>, vector<1x32x32xf32>
    %37 = vector.shape_cast %36 : vector<1x32x32xf32> to vector<32x32xf32>
    %cst_15 = arith.constant dense<0.000000e+00> : vector<128x32xf32>
    %38 = tpu.matmul %28, %37, %cst_15 {dimension_numbers = #tpu.dot_dimension_numbers<[1], [0], [0], [1], [0, 0, 1, 1], [], []>} : vector<128x32xf32>, vector<32x32xf32>, vector<128x32xf32> -> vector<128x32xf32>
    %39 = arith.addf %35, %38 : vector<128x32xf32>
    %c0_16 = arith.constant 0 : index
    %c0_17 = arith.constant 0 : index
    %40 = vector.load %arg4[%c0_16, %c0_17] : memref<1x32xf32, #tpu.memory_space<vmem>>, vector<1x32xf32>
    %41 = vector.broadcast %40 : vector<1x32xf32> to vector<128x32xf32>
    %42 = arith.addf %39, %41 : vector<128x32xf32>
    %cst_18 = arith.constant 0.000000e+00 : f32
    %43 = vector.broadcast %cst_18 : f32 to vector<128x32xf32>
    %44 = arith.maximumf %42, %43 : vector<128x32xf32>
    %45 = vector.shape_cast %44 : vector<128x32xf32> to vector<8x16x32xf32>
    %cst_19 = arith.constant dense<0xFF800000> : vector<8x32xf32>
    %46 = vector.multi_reduction <maximumf>, %45, %cst_19 [1] : vector<8x16x32xf32> to vector<8x32xf32>
    %47 = tpu.transpose %46, [1, 0] : vector<8x32xf32> -> vector<32x8xf32>
    %c0_20 = arith.constant 0 : index
    %c0_21 = arith.constant 0 : index
    %48 = vector.load %arg5[%c0_20, %c0_21] : memref<32x8xf32, #tpu.memory_space<vmem>>, vector<32x8xf32>
    tpu.vector_store %arg5[%c0_20, %c0_21], %47 {strides = array<i32>} : memref<32x8xf32, #tpu.memory_space<vmem>>, vector<32x8xf32>,
    return
  }
  func.func @transform_0(%arg0: i32) -> (i32, i32) {
    %c0_i32 = arith.constant 0 : i32
    %c0_i32_0 = arith.constant 0 : i32
    return %arg0, %c0_i32 : i32, i32
  }
  func.func @transform_1(%arg0: i32) -> (i32, i32) {
    %c0_i32 = arith.constant 0 : i32
    %c0_i32_0 = arith.constant 0 : i32
    %c0_i32_1 = arith.constant 0 : i32
    return %c0_i32, %c0_i32_0 : i32, i32
  }
  func.func @transform_2(%arg0: i32) -> (i32, i32, i32) {
    %c0_i32 = arith.constant 0 : i32
    %c0_i32_0 = arith.constant 0 : i32
    %c0_i32_1 = arith.constant 0 : i32
    %c0_i32_2 = arith.constant 0 : i32
    return %c0_i32, %c0_i32_0, %c0_i32_1 : i32, i32, i32
  }
  func.func @transform_3(%arg0: i32) -> (i32, i32) {
    %c0_i32 = arith.constant 0 : i32
    %c0_i32_0 = arith.constant 0 : i32
    %c0_i32_1 = arith.constant 0 : i32
    return %c0_i32, %c0_i32_0 : i32, i32
  }
  func.func @transform_4(%arg0: i32) -> (i32, i32) {
    %c0_i32 = arith.constant 0 : i32
    %c0_i32_0 = arith.constant 0 : i32
    return %c0_i32, %arg0 : i32, i32
  }
}

</mosaic_0001>

<bundles_post_ra>
// kernel: tpu_custom_call.1
= control target key start
LH: loop header
LB: loop body
LE: loop exit
PB: predicated region body
PF: predicated region fallthrough
CT: control target
= control target key end

     0   :  { %v1800_v0 = vmov 0   ;;  %s1801_s11 = smov 63   ;;  %v49_v60 = vlaneseq  ;;  %vm211_vm1 = vcmask 523264   ;;  %vm237_vm2 = vcmask 588800   ;;  %s2453_s0 = inlined_call_operand.vmem [shape: f32[128,9], index: 0, kind: input, shape index: {}]   ;;  %s2454_s1 = inlined_call_operand.vmem [shape: f32[72,32], index: 1, kind: input, shape index: {}]   ;;  %s2455_s2 = inlined_call_operand.vmem [shape: f32[3,32,32], index: 2, kind: input, shape index: {}]   ;;  %s2456_s3 = inlined_call_operand.vmem [shape: f32[1,32], index: 3, kind: input, shape index: {}]   ;;  %s2457_s4 = inlined_call_operand.vmem [shape: f32[32,8], index: 4, kind: output, shape index: {}]  }
   0x1   :  { %1799 = vset.pattern.permute.xlu1 %v1800_v0  ;;  %1798 = vset.pattern.permute.xlu0 %v1800_v0  ;;  %v19_v1 = vld [vmem:[%s2453_s0 + $0x10] sm:$0xff]  ;;  %v17_v2 = vld [vmem:[%s2453_s0] sm:$0xff]  ;;  %v1837_v3 = vld [vmem:[%s2453_s0 + $0x18] sm:$0xff] }
   0x2   :  { %v1767_v4 = vtrunc.f32 %v19_v1  ;;  %v1763_v5 = vtrunc.f32 %v17_v2  ;;  %v1769_v6 = vtrunc.f32 %v1837_v3  ;;  %v18_v7 = vld [vmem:[%s2453_s0 + $0x8] sm:$0xff]  ;;  %v1846_v9 = vld [vmem:[%s2453_s0 + $0x20] sm:$0xff]  ;;  %v235_v16 = vld [vmem:[%s2454_s1 + $0x38] sm:$0xff]  ;;  %v1934_v63 = vand.u32 127, %v49_v60 }
   0x3   :  { %v1765_v8 = vtrunc.f32 %v18_v7  ;;  %v1771_v14 = vtrunc.f32 %v1846_v9  ;;  %v236_v15 = vld [vmem:[%s2454_s1 + $0x40] sm:$0xff]  ;;  %v22_v17 = vld [vmem:[%s2453_s0 + $0x28] sm:$0xff]  ;;  %v234_v18 = vld [vmem:[%s2454_s1 + $0x30] sm:$0xff] }
   0x4   :  { %v1768_v10 = vcvt.f32.s32 %v1767_v4  ;;  %v1764_v11 = vcvt.f32.s32 %v1763_v5  ;;  %v1770_v12 = vcvt.f32.s32 %v1769_v6  ;;  %1617 = vmatprep.subr.mxu0 %v236_v15  ;;  %v1773_v20 = vtrunc.f32 %v22_v17  ;;  %v23_v21 = vld [vmem:[%s2453_s0 + $0x30] sm:$0xff]  ;;  %v233_v22 = vld [vmem:[%s2454_s1 + $0x28] sm:$0xff]  ;;  %v232_v25 = vld [vmem:[%s2454_s1 + $0x20] sm:$0xff] }
   0x5   :  { %v1766_v13 = vcvt.f32.s32 %v1765_v8  ;;  %1618 = vmatpush3.msra.mxu0 %v236_v15  ;;  %v1772_v19 = vcvt.f32.s32 %v1771_v14  ;;  %v1775_v24 = vtrunc.f32 %v23_v21  ;;  %v24_v26 = vld [vmem:[%s2453_s0 + $0x38] sm:$0xff]  ;;  %v25_v30 = vld [vmem:[%s2453_s0 + $0x40] sm:$0xff]  ;;  %v230_v31 = vld [vmem:[%s2454_s1 + $0x10] sm:$0xff] }
   0x6   :  { %58 = vperm.xlu1 %1799, %v1768_v10   ;;  %52 = vperm.xlu0 %1798, %v1764_v11   ;;  %v1774_v23 = vcvt.f32.s32 %v1773_v20  ;;  %v231_v27 = vld [vmem:[%s2454_s1 + $0x18] sm:$0xff]  ;;  %v1777_v29 = vtrunc.f32 %v24_v26  ;;  %v1779_v33 = vtrunc.f32 %v25_v30  ;;  %v229_v34 = vld [vmem:[%s2454_s1 + $0x8] sm:$0xff]  ;;  %v228_v36 = vld [vmem:[%s2454_s1] sm:$0xff] }
   0x7   :  { %1619 = vmatprep.subr.mxu0 %v235_v16  ;;  %v1776_v28 = vcvt.f32.s32 %v1775_v24  ;;  %v26_v35 = vld [vmem:[%s2453_s0 + $0x48] sm:$0xff]  ;;  %v27_v39 = vld [vmem:[%s2453_s0 + $0x50] sm:$0xff]  ;;  %v28_v42 = vld [vmem:[%s2453_s0 + $0x58] sm:$0xff] }
   0x8   :  { %1620 = vmatpush3.msra.mxu0 %v235_v16  ;;  %v1778_v32 = vcvt.f32.s32 %v1777_v29  ;;  %v1780_v37 = vcvt.f32.s32 %v1779_v33  ;;  %v1781_v38 = vtrunc.f32 %v26_v35  ;;  %v1783_v41 = vtrunc.f32 %v27_v39  ;;  %v29_v45 = vld [vmem:[%s2453_s0 + $0x60] sm:$0xff]  ;;  %v30_v48 = vld [vmem:[%s2453_s0 + $0x68] sm:$0xff]  ;;  %v31_v51 = vld [vmem:[%s2453_s0 + $0x70] sm:$0xff] }
   0x9   :  { %1621 = vmatprep.subr.mxu0 %v234_v18  ;;  %v1785_v44 = vtrunc.f32 %v28_v42  ;;  %v1787_v47 = vtrunc.f32 %v29_v45  ;;  %v1789_v50 = vtrunc.f32 %v30_v48  ;;  %v1791_v53 = vtrunc.f32 %v31_v51  ;;  %v32_v54 = vld [vmem:[%s2453_s0 + $0x78] sm:$0xff]  ;;  %v1477_v59 = vld [vmem:[%s2455_s2 + $0x30] sm:$0xff] }
   0xa   :  { %61 = vperm.xlu1 %1799, %v1770_v12   ;;  %55 = vperm.xlu0 %1798, %v1766_v13   ;;  %v1782_v40 = vcvt.f32.s32 %v1781_v38  ;;  %v1784_v43 = vcvt.f32.s32 %v1783_v41  ;;  %v1793_v56 = vtrunc.f32 %v32_v54  ;;  %v1478_v58 = vld [vmem:[%s2455_s2 + $0x38] sm:$0xff] }
   0xb   :  { %1622 = vmatpush3.msra.mxu0 %v234_v18  ;;  %v1786_v46 = vcvt.f32.s32 %v1785_v44  ;;  %v1788_v49 = vcvt.f32.s32 %v1787_v47  ;;  %v1790_v52 = vcvt.f32.s32 %v1789_v50  ;;  %v1792_v55 = vcvt.f32.s32 %v1791_v53  ;;  %1659 = vmatprep.subr.mxu1 %v1478_v58 }
   0xc   :  { %1623 = vmatprep.subr.mxu0 %v233_v22  ;;  %v1794_v57 = vcvt.f32.s32 %v1793_v56  ;;  %1660 = vmatpush3.msra.mxu1 %v1478_v58 }
   0xd   :  { %1624 = vmatpush3.msra.mxu0 %v233_v22  ;;  %1661 = vmatprep.subr.mxu1 %v1477_v59 }
   0xe   :  { %64 = vperm.xlu1 %1799, %v1772_v19   ;;  %163 = vrot.lane.b32.xlu0 %v17_v2, %s1801_s11  ;;  %v1802_v2 = vmov 0.0  }
   0xf   :  { %1625 = vmatprep.subr.mxu0 %v232_v25  ;;  %1662 = vmatpush3.msra.mxu1 %v1477_v59 }
  0x10   :  { %1626 = vmatpush3.msra.mxu0 %v232_v25 }
  0x11   :  { %1627 = vmatprep.subr.mxu0 %v231_v27 }
  0x12   :  { %67 = vperm.xlu1 %1799, %v1774_v23   ;;  %165 = vrot.lane.b32.xlu0 %v18_v7, %s1801_s11 }
  0x13   :  { %1628 = vmatpush3.msra.mxu0 %v231_v27 }
  0x14   :  { %1629 = vmatprep.subr.mxu0 %v230_v31 }
  0x15   :  { %1630 = vmatpush3.msra.mxu0 %v230_v31 }
  0x16   :  { %70 = vperm.xlu1 %1799, %v1776_v28   ;;  %167 = vrot.lane.b32.xlu0 %v19_v1, %s1801_s11 }
  0x17   :  { %1631 = vmatprep.subr.mxu0 %v229_v34 }
  0x18   :  { %1632 = vmatpush3.msra.mxu0 %v229_v34 }
  0x19   :  { %1633 = vmatprep.subr.mxu0 %v228_v36 }
  0x1a   :  { %73 = vperm.xlu1 %1799, %v1778_v32   ;;  %169 = vrot.lane.b32.xlu0 %v1837_v3, %s1801_s11 }
  0x1b   :  { %1634 = vmatpush3.msra.mxu0 %v228_v36 }
  0x1e   :  { %76 = vperm.xlu1 %1799, %v1780_v37   ;;  %171 = vrot.lane.b32.xlu0 %v1846_v9, %s1801_s11 }
  0x22   :  { %79 = vperm.xlu1 %1799, %v1782_v40   ;;  %173 = vrot.lane.b32.xlu0 %v22_v17, %s1801_s11 }
  0x26   :  { %82 = vperm.xlu1 %1799, %v1784_v43   ;;  %175 = vrot.lane.b32.xlu0 %v23_v21, %s1801_s11 }
  0x2a   :  { %85 = vperm.xlu1 %1799, %v1786_v46   ;;  %177 = vrot.lane.b32.xlu0 %v24_v26, %s1801_s11 }
  0x2e   :  { %88 = vperm.xlu1 %1799, %v1788_v49   ;;  %179 = vrot.lane.b32.xlu0 %v25_v30, %s1801_s11 }
  0x32   :  { %91 = vperm.xlu1 %1799, %v1790_v52   ;;  %181 = vrot.lane.b32.xlu0 %v26_v35, %s1801_s11 }
  0x36   :  { %94 = vperm.xlu1 %1799, %v1792_v55   ;;  %183 = vrot.lane.b32.xlu0 %v27_v39, %s1801_s11 }
  0x3a   :  { %97 = vperm.xlu1 %1799, %v1794_v57   ;;  %185 = vrot.lane.b32.xlu0 %v28_v42, %s1801_s11 }
  0x3e   :  { %189 = vrot.lane.b32.xlu1 %v30_v48, %s1801_s11  ;;  %187 = vrot.lane.b32.xlu0 %v29_v45, %s1801_s11 }
  0x42   :  { %193 = vrot.lane.b32.xlu1 %v32_v54, %s1801_s11  ;;  %191 = vrot.lane.b32.xlu0 %v31_v51, %s1801_s11 }
  0x81   :  { %v59_v61 = vpop.permute.xlu1 %58  ;;  %v53_v62 = vpop.permute.xlu0 %52 }
  0x82   :  { %vm99_vm0 = vcmp.eq.s32.totalorder %v1934_v63, %v53_v62  ;;  %vm101_vm4 = vcmp.eq.s32.totalorder %v1934_v63, %v59_v61 }
  0x83   :  { %v1443_v3 = vsel %vm99_vm0, 1.0, %v1802_v2  ;;  %v1445_v11 = vsel %vm101_vm4, 1.0, %v1802_v2 }
  0x85   :  { %v62_v0 = vpop.permute.xlu1 %61  ;;  %v56_v1 = vpop.permute.xlu0 %55 }
  0x86   :  { %vm100_vm3 = vcmp.eq.s32.totalorder %v1934_v63, %v56_v1  ;;  %vm102_vm5 = vcmp.eq.s32.totalorder %v1934_v63, %v62_v0  ;;  %v1475_v1 = vld [vmem:[%s2455_s2 + $0x20] sm:$0xff] }
  0x87   :  { %v1444_v7 = vsel %vm100_vm3, 1.0, %v1802_v2  ;;  %v1446_v15 = vsel %vm102_vm5, 1.0, %v1802_v2 }
  0x89   :  { %v65_v4 = vpop.permute.xlu1 %64  ;;  %v164_v5 = vpop.permute.xlu0 %163 }
  0x8a   :  { %v212_v6 = vsel %vm211_vm1, %v1443_v3, %v164_v5  ;;  %vm103_vm6 = vcmp.eq.s32.totalorder %v1934_v63, %v65_v4  ;;  %v2016_v3 = vld [vmem:[%s2455_s2 + $0x50] sm:$0xff]  ;;  %v2023_v4 = vld [vmem:[%s2455_s2 + $0x48] sm:$0xff]  ;;  %v2030_v5 = vld [vmem:[%s2455_s2 + $0x40] sm:$0xff] }
  0x8b   :  { %1635 = vmatprep.mubr.msk.f32.mxu0 %vm237_vm2, %v212_v6  ;;  %v1447_v19 = vsel %vm103_vm6, 1.0, %v1802_v2  ;;  %v661_v6 = vld [vmem:[%s2455_s2 + $0x18] sm:$0xff] }
  0x8d   :  { %v68_v8 = vpop.permute.xlu1 %67  ;;  %v166_v9 = vpop.permute.xlu0 %165 }
  0x8e   :  { %v213_v10 = vsel %vm211_vm1, %v1444_v7, %v166_v9  ;;  %vm104_vm7 = vcmp.eq.s32.totalorder %v1934_v63, %v68_v8  ;;  %v2038_v7 = vshrl.u32 %v49_v60, 7  ;;  %v660_v60 = vld [vmem:[%s2455_s2 + $0x10] sm:$0xff] }
  0x8f   :  { %1636 = vmatmul.mubr.msk.f32.vlgmr.msra.gmra.mxu0 %vm237_vm2, %v213_v10  ;;  %v1448_v23 = vsel %vm104_vm7, 1.0, %v1802_v2 }
  0x91   :  { %v71_v12 = vpop.permute.xlu1 %70  ;;  %v168_v13 = vpop.permute.xlu0 %167 }
  0x92   :  { %v214_v14 = vsel %vm211_vm1, %v1445_v11, %v168_v13  ;;  %vm105_vm8 = vcmp.eq.s32.totalorder %v1934_v63, %v71_v12  ;;  %v433_v12 = vadd.s32 8, %v2038_v7 }
  0x93   :  { %1638 = vmatprep.mubr.msk.f32.mxu0 %vm237_vm2, %v214_v14  ;;  %v1449_v27 = vsel %vm105_vm8, 1.0, %v1802_v2  ;;  %v659_v14 = vld [vmem:[%s2455_s2 + $0x8] sm:$0xff] }
  0x95   :  { %v74_v16 = vpop.permute.xlu1 %73  ;;  %v170_v17 = vpop.permute.xlu0 %169 }
  0x96   :  { %v215_v18 = vsel %vm211_vm1, %v1446_v15, %v170_v17  ;;  %vm106_vm9 = vcmp.eq.s32.totalorder %v1934_v63, %v74_v16  ;;  %v449_v15 = vand.u32 15, %v433_v12  ;;  %v658_v16 = vld [vmem:[%s2455_s2] sm:$0xff]  ;;  %v448_v12 = vand.u32 15, %v2038_v7 }
  0x97   :  { %1639 = vmatmul.mubr.msk.f32.gmra.mxu0 %vm237_vm2, %v215_v18  ;;  %v1450_v31 = vsel %vm106_vm9, 1.0, %v1802_v2 }
  0x98   :  { %vm562_vm4 = vcmp.eq.s32.totalorder %v449_v15, 15 }
  0x99   :  { %v77_v20 = vpop.permute.xlu1 %76  ;;  %v172_v21 = vpop.permute.xlu0 %171 }
  0x9a   :  { %v216_v22 = vsel %vm211_vm1, %v1447_v19, %v172_v21  ;;  %vm107_vm10 = vcmp.eq.s32.totalorder %v1934_v63, %v77_v20  ;;  %v435_v20 = vadd.s32 24, %v2038_v7 }
  0x9b   :  { %1641 = vmatprep.mubr.msk.f32.mxu0 %vm237_vm2, %v216_v22  ;;  %v1451_v35 = vsel %vm107_vm10, 1.0, %v1802_v2  ;;  %vm496_vm10 = vcmp.lt.s32.totalorder %v2038_v7, 1 }
  0x9d   :  { %v80_v24 = vpop.permute.xlu1 %79  ;;  %v174_v25 = vpop.permute.xlu0 %173 }
  0x9e   :  { %v217_v26 = vsel %vm211_vm1, %v1448_v23, %v174_v25  ;;  %vm108_vm11 = vcmp.eq.s32.totalorder %v1934_v63, %v80_v24  ;;  %v451_v25 = vand.u32 15, %v435_v20 }
  0x9f   :  { %1642 = vmatmul.mubr.msk.f32.gmra.mxu0 %vm237_vm2, %v217_v26  ;;  %v1452_v39 = vsel %vm108_vm11, 1.0, %v1802_v2 }
  0xa0   :  { %vm564_vm5 = vcmp.eq.s32.totalorder %v451_v25, 15 }
  0xa1   :  { %v83_v28 = vpop.permute.xlu1 %82  ;;  %v176_v29 = vpop.permute.xlu0 %175 }
  0xa2   :  { %v218_v30 = vsel %vm211_vm1, %v1449_v27, %v176_v29  ;;  %vm109_vm12 = vcmp.eq.s32.totalorder %v1934_v63, %v83_v28  ;;  %v437_v29 = vadd.s32 40, %v2038_v7 }
  0xa3   :  { %1644 = vmatprep.mubr.msk.f32.mxu0 %vm237_vm2, %v218_v30  ;;  %v1453_v43 = vsel %vm109_vm12, 1.0, %v1802_v2 }
  0xa5   :  { %v86_v32 = vpop.permute.xlu1 %85  ;;  %v178_v33 = vpop.permute.xlu0 %177 }
  0xa6   :  { %v219_v34 = vsel %vm211_vm1, %v1450_v31, %v178_v33  ;;  %vm110_vm13 = vcmp.eq.s32.totalorder %v1934_v63, %v86_v32 }
  0xa7   :  { %1645 = vmatmul.mubr.msk.f32.gmra.mxu0 %vm237_vm2, %v219_v34  ;;  %v1454_v47 = vsel %vm110_vm13, 1.0, %v1802_v2  ;;  %v453_v34 = vand.u32 15, %v437_v29  ;;  %vm2198_vm13 = vcmp.eq.s32.totalorder %v448_v12, 0 }
  0xa9   :  { %v89_v36 = vpop.permute.xlu1 %88  ;;  %v180_v37 = vpop.permute.xlu0 %179  ;;  %vm566_vm6 = vcmp.eq.s32.totalorder %v453_v34, 15 }
  0xaa   :  { %v220_v38 = vsel %vm211_vm1, %v1451_v35, %v180_v37  ;;  %vm111_vm14 = vcmp.eq.s32.totalorder %v1934_v63, %v89_v36 }
  0xab   :  { %1647 = vmatprep.mubr.msk.f32.mxu0 %vm237_vm2, %v220_v38  ;;  %v1455_v51 = vsel %vm111_vm14, 1.0, %v1802_v2  ;;  %v439_v38 = vadd.s32 56, %v2038_v7 }
  0xad   :  { %v92_v40 = vpop.permute.xlu1 %91  ;;  %v182_v41 = vpop.permute.xlu0 %181 }
  0xae   :  { %v221_v42 = vsel %vm211_vm1, %v1452_v39, %v182_v41  ;;  %vm112_vm15 = vcmp.eq.s32.totalorder %v1934_v63, %v92_v40 }
  0xaf   :  { %1648 = vmatmul.mubr.msk.f32.gmra.mxu0 %vm237_vm2, %v221_v42  ;;  %v1456_v52 = vsel %vm112_vm15, 1.0, %v1802_v2 }
  0xb1   :  { %v95_v44 = vpop.permute.xlu1 %94  ;;  %v184_v45 = vpop.permute.xlu0 %183 }
  0xb2   :  { %v222_v46 = vsel %vm211_vm1, %v1453_v43, %v184_v45  ;;  %vm113_vm0 = vcmp.eq.s32.totalorder %v1934_v63, %v95_v44  ;;  %v455_v43 = vand.u32 15, %v439_v38  ;;  %v441_v45 = vadd.s32 72, %v2038_v7 }
  0xb3   :  { %1650 = vmatprep.mubr.msk.f32.mxu0 %vm237_vm2, %v222_v46  ;;  %v1457_v57 = vsel %vm113_vm0, 1.0, %v1802_v2 }
  0xb4   :  { %vm568_vm7 = vcmp.eq.s32.totalorder %v455_v43, 15 }
  0xb5   :  { %v98_v48 = vpop.permute.xlu1 %97  ;;  %v186_v49 = vpop.permute.xlu0 %185 }
  0xb6   :  { %v223_v50 = vsel %vm211_vm1, %v1454_v47, %v186_v49  ;;  %vm114_vm3 = vcmp.eq.s32.totalorder %v1934_v63, %v98_v48  ;;  %v1476_v63 = vld [vmem:[%s2455_s2 + $0x28] sm:$0xff]  ;;  %v442_v47 = vadd.s32 80, %v2038_v7 }
  0xb7   :  { %1651 = vmatmul.mubr.msk.f32.gmra.mxu0 %vm237_vm2, %v223_v50  ;;  %v1458_v58 = vsel %vm114_vm3, 1.0, %v1802_v2  ;;  %1663 = vmatprep.subr.mxu1 %v1476_v63  ;;  %v2009_v2 = vld [vmem:[%s2455_s2 + $0x58] sm:$0xff] }
  0xb8   :  { %1664 = vmatpush3.msra.mxu1 %v1476_v63  ;;  %1723 = vmatprep.subr.mxu0 %v2009_v2 }
  0xb9   :  { %v190_v53 = vpop.permute.xlu1 %189  ;;  %v188_v54 = vpop.permute.xlu0 %187  ;;  %1665 = vmatprep.subr.mxu1 %v1475_v1  ;;  %1724 = vmatpush3.msra.mxu0 %v2009_v2 }
  0xba   :  { %v225_v55 = vsel %vm211_vm1, %v1456_v52, %v190_v53  ;;  %v224_v56 = vsel %vm211_vm1, %v1455_v51, %v188_v54  ;;  %1666 = vmatpush3.msra.mxu1 %v1475_v1  ;;  %1725 = vmatprep.subr.mxu0 %v2016_v3  ;;  %v457_v51 = vand.u32 15, %v441_v45  ;;  %v434_v52 = vadd.s32 16, %v2038_v7 }
  0xbb   :  { %1653 = vmatprep.mubr.msk.f32.mxu0 %vm237_vm2, %v224_v56  ;;  %1726 = vmatpush3.msra.mxu0 %v2016_v3  ;;  %v443_v54 = vadd.s32 88, %v2038_v7  ;;  %v444_v56 = vadd.s32 96, %v2038_v7  ;;  %v2149_v1 = vadd.s32 32, %v2038_v7 }
  0xbc   :  { %1654 = vmatmul.mubr.msk.f32.gmra.mxu0 %vm237_vm2, %v225_v55  ;;  %1727 = vmatprep.subr.mxu0 %v2023_v4  ;;  %v458_v55 = vand.u32 15, %v442_v47  ;;  %vm2144_vm8 = vcmp.eq.s32.totalorder %v457_v51, 15  ;;  %v450_v63 = vand.u32 15, %v434_v52 }
  0xbd   :  { %v194_v59 = vpop.permute.xlu1 %193  ;;  %v192_v61 = vpop.permute.xlu0 %191  ;;  %1728 = vmatpush3.msra.mxu0 %v2023_v4  ;;  %1691 = vmatprep.subr.mxu1 %v661_v6 }
  0xbe   :  { %v227_v62 = vsel %vm211_vm1, %v1458_v58, %v194_v59  ;;  %v226_v0 = vsel %vm211_vm1, %v1457_v57, %v192_v61  ;;  %1729 = vmatprep.subr.mxu0 %v2030_v5  ;;  %vm667_vm1 = vcmask 261120   ;;  %v445_v58 = vadd.s32 104, %v2038_v7 }
  0xbf   :  { %1656 = vmatprep.mubr.msk.f32.mxu0 %vm237_vm2, %v226_v0  ;;  %1730 = vmatpush3.msra.mxu0 %v2030_v5  ;;  %v446_v61 = vadd.s32 112, %v2038_v7  ;;  %vm2154_vm9 = vcmp.eq.s32.totalorder %v458_v55, 0  ;;  %vm2185_vm12 = vcmp.eq.s32.totalorder %v450_v63, 0  ;;  %v438_v0 = vadd.s32 48, %v2038_v7 }
  0xc0   :  { %1657 = vmatmul.mubr.msk.f32.gmra.mxu0 %vm237_vm2, %v227_v62  ;;  %vm593_vm2 = vcmp.lt.s32.totalorder %v2038_v7, 7  ;;  %v447_v62 = vadd.s32 120, %v2038_v7 }
  0xc1   :  { %v462_v20 = vand.u32 15, %v446_v61  ;;  %v454_v29 = vand.u32 15, %v438_v0 }
  0xc3   :  { %vm2215_vm0 = vcmp.eq.s32.totalorder %v462_v20, 0 }
 0x14f   :  { %v2040_v8 = vpop.f32.mrf.mxu0 }
 0x150   :  { %v578_v10 = vrot.slane %v2040_v8, 1  ;;  %v481_v45 = vrot.slane %v2040_v8, 7 }
 0x151   :  { %v2042_v9 = vpop.f32.mrf.mxu0 }
 0x152   :  { %v577_v11 = vrot.slane %v2042_v9, 1  ;;  %1667 = vmatprep.mubr.msk.f32.mxu1 %vm667_vm1, %v2042_v9  ;;  %v480_v47 = vrot.slane %v2042_v9, 7 }
 0x153   :  { %1668 = vmatmul.mubr.msk.f32.vlgmr.msra.gmra.mxu1 %vm667_vm1, %v2040_v8 }
 0x154   :  { %v608_v13 = vsel %vm593_vm2, %v577_v11, %v578_v10  ;;  %1692 = vmatpush3.msra.mxu1 %v661_v6  ;;  %v511_v20 = vsel %vm496_vm10, %v480_v47, %v481_v45 }
 0x155   :  { %1731 = vmatprep.mubr.msk.f32.mxu0 %vm667_vm1, %v608_v13  ;;  %1693 = vmatprep.subr.mxu1 %v660_v60  ;;  %v460_v13 = vand.u32 15, %v444_v56 }
 0x156   :  { %1694 = vmatpush3.msra.mxu1 %v660_v60 }
 0x157   :  { %v2066_v17 = vpop.f32.mrf.mxu0  ;;  %1695 = vmatprep.subr.mxu1 %v659_v14  ;;  %vm2206_vm15 = vcmp.eq.s32.totalorder %v460_v13, 0 }
 0x158   :  { %1696 = vmatpush3.msra.mxu1 %v659_v14  ;;  %v580_v21 = vrot.slane %v2066_v17, 1 }
 0x159   :  { %v2068_v18 = vpop.f32.mrf.mxu0  ;;  %1697 = vmatprep.subr.mxu1 %v658_v16 }
 0x15a   :  { %v579_v19 = vrot.slane %v2068_v18, 1  ;;  %1670 = vmatprep.mubr.msk.f32.mxu1 %vm667_vm1, %v2068_v18  ;;  %1698 = vmatpush3.msra.mxu1 %v658_v16  ;;  %v482_v51 = vrot.slane %v2068_v18, 7 }
 0x15b   :  { %1671 = vmatmul.mubr.msk.f32.gmra.mxu1 %vm667_vm1, %v2066_v17  ;;  %1755 = vmatprep.subr.mxu1 %v2009_v2 }
 0x15c   :  { %v607_v22 = vsel %vm593_vm2, %v578_v10, %v579_v19  ;;  %v606_v24 = vsel %vm593_vm2, %v579_v19, %v580_v21  ;;  %v459_v10 = vand.u32 15, %v443_v54  ;;  %v461_v19 = vand.u32 15, %v445_v58 }
 0x15d   :  { %v643_v23 = vsel %vm562_vm4, 0.0, %v607_v22  ;;  %v510_v13 = vsel %vm496_vm10, %v481_v45, %v482_v51 }
 0x15e   :  { %1732 = vmatmul.mubr.msk.f32.vlgmr.msra.gmra.mxu0 %vm667_vm1, %v643_v23  ;;  %vm2181_vm11 = vcmp.eq.s32.totalorder %v459_v10, 15  ;;  %vm2202_vm14 = vcmp.eq.s32.totalorder %v461_v19, 15 }
 0x15f   :  { %v2083_v26 = vpop.f32.mrf.mxu0  ;;  %1734 = vmatprep.mubr.msk.f32.mxu0 %vm667_vm1, %v606_v24 }
 0x160   :  { %v582_v30 = vrot.slane %v2083_v26, 1 }
 0x161   :  { %v2086_v27 = vpop.f32.mrf.mxu0 }
 0x162   :  { %v581_v28 = vrot.slane %v2086_v27, 1  ;;  %1673 = vmatprep.mubr.msk.f32.mxu1 %vm667_vm1, %v2086_v27  ;;  %v484_v10 = vrot.slane %v2086_v27, 7 }
 0x163   :  { %1674 = vmatmul.mubr.msk.f32.gmra.mxu1 %vm667_vm1, %v2083_v26 }
 0x164   :  { %v605_v31 = vsel %vm593_vm2, %v580_v21, %v581_v28  ;;  %v604_v33 = vsel %vm593_vm2, %v581_v28, %v582_v30  ;;  %v463_v21 = vand.u32 15, %v447_v62 }
 0x165   :  { %v645_v32 = vsel %vm564_vm5, 0.0, %v605_v31  ;;  %v452_v31 = vand.u32 15, %v2149_v1  ;;  %vm470_vm5 = vcmp.eq.s32.totalorder %v454_v29, 0 }
 0x166   :  { %1735 = vmatmul.mubr.msk.f32.gmra.mxu0 %vm667_vm1, %v645_v32  ;;  %vm2219_vm3 = vcmp.eq.s32.totalorder %v463_v21, 15  ;;  %v483_v21 = vrot.slane %v2066_v17, 7 }
 0x167   :  { %v2100_v35 = vpop.f32.mrf.mxu0  ;;  %1737 = vmatprep.mubr.msk.f32.mxu0 %vm667_vm1, %v604_v33  ;;  %vm2305_vm4 = vcmp.eq.s32.totalorder %v452_v31, 0 }
 0x168   :  { %v584_v39 = vrot.slane %v2100_v35, 1  ;;  %v508_v17 = vsel %vm496_vm10, %v483_v21, %v484_v10  ;;  %v509_v31 = vsel %vm496_vm10, %v482_v51, %v483_v21 }
 0x169   :  { %v2103_v36 = vpop.f32.mrf.mxu0 }
 0x16a   :  { %v583_v37 = vrot.slane %v2103_v36, 1  ;;  %1676 = vmatprep.mubr.msk.f32.mxu1 %vm667_vm1, %v2103_v36 }
 0x16b   :  { %1677 = vmatmul.mubr.msk.f32.gmra.mxu1 %vm667_vm1, %v2100_v35 }
 0x16c   :  { %v603_v40 = vsel %vm593_vm2, %v582_v30, %v583_v37  ;;  %v602_v42 = vsel %vm593_vm2, %v583_v37, %v584_v39  ;;  %v485_v30 = vrot.slane %v2083_v26, 7 }
 0x16d   :  { %v647_v41 = vsel %vm566_vm6, 0.0, %v603_v40 }
 0x16e   :  { %1738 = vmatmul.mubr.msk.f32.gmra.mxu0 %vm667_vm1, %v647_v41  ;;  %v507_v38 = vsel %vm496_vm10, %v484_v10, %v485_v30 }
 0x16f   :  { %v2117_v44 = vpop.f32.mrf.mxu0  ;;  %1740 = vmatprep.mubr.msk.f32.mxu0 %vm667_vm1, %v602_v42 }
 0x170   :  { %v586_v49 = vrot.slane %v2117_v44, 1  ;;  %v489_v14 = vrot.slane %v2117_v44, 7 }
 0x171   :  { %v2121_v46 = vpop.f32.mrf.mxu0 }
 0x172   :  { %v585_v48 = vrot.slane %v2121_v46, 1  ;;  %1679 = vmatprep.mubr.msk.f32.mxu1 %vm667_vm1, %v2121_v46 }
 0x173   :  { %1680 = vmatmul.mubr.msk.f32.gmra.mxu1 %vm667_vm1, %v2117_v44 }
 0x174   :  { %v601_v50 = vsel %vm593_vm2, %v584_v39, %v585_v48  ;;  %v600_v57 = vsel %vm593_vm2, %v585_v48, %v586_v49 }
 0x175   :  { %v649_v53 = vsel %vm568_vm7, 0.0, %v601_v50  ;;  %vm1391_vm7 = vcmask 1043459  }
 0x176   :  { %1741 = vmatmul.mubr.msk.f32.gmra.mxu0 %vm667_vm1, %v649_v53 }
 0x177   :  { %v2139_v59 = vpop.f32.mrf.mxu0  ;;  %1743 = vmatprep.mubr.msk.f32.mxu0 %vm667_vm1, %v600_v57 }
 0x178   :  { %v588_v22 = vrot.slane %v2139_v59, 1  ;;  %v491_v48 = vrot.slane %v2139_v59, 7 }
 0x179   :  { %v2151_v6 = vpop.f32.mrf.mxu0 }
 0x17a   :  { %v490_v15 = vrot.slane %v2151_v6, 7  ;;  %v587_v16 = vrot.slane %v2151_v6, 1  ;;  %1682 = vmatprep.mubr.msk.f32.mxu1 %vm667_vm1, %v2151_v6 }
 0x17b   :  { %1683 = vmatmul.mubr.msk.f32.gmra.mxu1 %vm667_vm1, %v2139_v59 }
 0x17c   :  { %v2167_v23 = vpop.f32.mrf.mxu0  ;;  %v599_v24 = vsel %vm593_vm2, %v586_v49, %v587_v16  ;;  %v2177_v25 = vsel %vm496_vm10, %v489_v14, %v490_v15  ;;  %v598_v34 = vsel %vm593_vm2, %v587_v16, %v588_v22 }
 0x17d   :  { %v651_v28 = vsel %vm2144_vm8, 0.0, %v599_v24  ;;  %v555_v32 = vsel %vm2154_vm9, 0.0, %v2177_v25  ;;  %v590_v49 = vrot.slane %v2167_v23, 1  ;;  %v493_v54 = vrot.slane %v2167_v23, 7 }
 0x17e   :  { %v2193_v33 = vpop.f32.mrf.mxu0  ;;  %1744 = vmatmul.mubr.msk.f32.gmra.mxu0 %vm667_vm1, %v651_v28  ;;  %v486_v28 = vrot.slane %v2103_v36, 7  ;;  %v488_v36 = vrot.slane %v2121_v46, 7  ;;  %vm1393_vm8 = vcmask 1044484   ;;  %vm1395_vm9 = vcmask 1045509  }
 0x17f   :  { %v492_v40 = vrot.slane %v2193_v33, 7  ;;  %v589_v41 = vrot.slane %v2193_v33, 1  ;;  %1685 = vmatprep.mubr.msk.f32.mxu1 %vm667_vm1, %v2193_v33  ;;  %1746 = vmatprep.mubr.msk.f32.mxu0 %vm667_vm1, %v598_v34  ;;  %v440_v34 = vadd.s32 64, %v2038_v7 }
 0x180   :  { %v2227_v50 = vpop.f32.mrf.mxu0  ;;  %1686 = vmatmul.mubr.msk.f32.gmra.mxu1 %vm667_vm1, %v2167_v23  ;;  %v506_v26 = vsel %vm496_vm10, %v485_v30, %v486_v28 }
 0x181   :  { %v495_v52 = vrot.slane %v2227_v50, 7  ;;  %v592_v53 = vrot.slane %v2227_v50, 1  ;;  %v597_v8 = vsel %vm593_vm2, %v588_v22, %v589_v41  ;;  %v596_v57 = vsel %vm593_vm2, %v589_v41, %v590_v49 }
 0x182   :  { %v2237_v55 = vpop.f32.mrf.mxu0  ;;  %v653_v56 = vsel %vm2181_vm11, 0.0, %v597_v8  ;;  %v2249_v18 = vsel %vm496_vm10, %v491_v48, %v492_v40  ;;  %v547_v22 = vsel %vm2185_vm12, 0.0, %v510_v13  ;;  %v456_v37 = vand.u32 15, %v440_v34 }
 0x183   :  { %v2257_v58 = vsel %vm593_vm2, %v592_v53, %v577_v11  ;;  %v494_v61 = vrot.slane %v2237_v55, 7  ;;  %v591_v62 = vrot.slane %v2237_v55, 1  ;;  %1688 = vmatprep.mubr.msk.f32.mxu1 %vm667_vm1, %v2237_v55  ;;  %1747 = vmatmul.mubr.msk.f32.gmra.mxu0 %vm667_vm1, %v653_v56  ;;  %v512_v9 = vsel %vm496_vm10, %v495_v52, %v480_v47 }
 0x184   :  { %1689 = vmatmul.mubr.msk.f32.gmra.mxu1 %vm667_vm1, %v2227_v50  ;;  %1749 = vmatprep.mubr.msk.f32.mxu0 %vm667_vm1, %v596_v57  ;;  %v545_v11 = vsel %vm2198_vm13, 0.0, %v512_v9  ;;  %v557_v63 = vsel %vm2206_vm15, 0.0, %v2249_v18  ;;  %v657_v1 = vsel %vm2219_vm3, 0.0, %v2257_v58  ;;  %v551_v46 = vsel %vm470_vm5, 0.0, %v506_v26 }
 0x185   :  { %1699 = vmatprep.mubr.msk.f32.mxu1 %vm667_vm1, %v545_v11  ;;  %v595_v12 = vsel %vm593_vm2, %v590_v49, %v591_v62  ;;  %v498_v16 = vsel %vm496_vm10, %v493_v54, %v494_v61  ;;  %vm472_vm6 = vcmp.eq.s32.totalorder %v456_v37, 0  ;;  %v501_v41 = vsel %vm496_vm10, %v490_v15, %v491_v48 }
 0x186   :  { %v655_v27 = vsel %vm2202_vm14, 0.0, %v595_v12  ;;  %v559_v19 = vsel %vm2215_vm0, 0.0, %v498_v16  ;;  %v499_v44 = vsel %vm496_vm10, %v492_v40, %v493_v54  ;;  %v497_v59 = vsel %vm496_vm10, %v494_v61, %v495_v52 }
 0x187   :  { %1750 = vmatmul.mubr.msk.f32.gmra.mxu0 %vm667_vm1, %v655_v27  ;;  %v594_v6 = vsel %vm593_vm2, %v591_v62, %v592_v53  ;;  %vm1387_vm2 = vcmask 1041409   ;;  %vm1399_vm11 = vcmask 1047559   ;;  %vm1434_vm12 = vcmask 64512  }
 0x188   :  { %1700 = vmatmul.mubr.msk.f32.vlgmr.msra.gmra.mxu1 %vm667_vm1, %v511_v20 }
 0x189   :  { %1759 = vmatpush3.msra.mxu1 %v2009_v2  ;;  %1702 = vmatprep.mubr.msk.f32.mxu1 %vm667_vm1, %v547_v22  ;;  %v549_v2 = vsel %vm2305_vm4, 0.0, %v508_v17 }
 0x18a   :  { %1756 = vmatprep.subr.mxu1 %v2016_v3 }
 0x18b   :  { %1760 = vmatpush3.msra.mxu1 %v2016_v3  ;;  %v487_v3 = vrot.slane %v2100_v35, 7 }
 0x18c   :  { %1703 = vmatmul.mubr.msk.f32.gmra.mxu1 %vm667_vm1, %v509_v31  ;;  %1757 = vmatprep.subr.mxu1 %v2023_v4 }
 0x18d   :  { %1705 = vmatprep.mubr.msk.f32.mxu1 %vm667_vm1, %v549_v2  ;;  %1761 = vmatpush3.msra.mxu1 %v2023_v4  ;;  %v504_v39 = vsel %vm496_vm10, %v487_v3, %v488_v36  ;;  %v505_v4 = vsel %vm496_vm10, %v486_v28, %v487_v3 }
 0x18e   :  { %1758 = vmatprep.subr.mxu1 %v2030_v5  ;;  %v553_v35 = vsel %vm472_vm6, 0.0, %v504_v39 }
 0x18f   :  { %1762 = vmatpush3.msra.mxu1 %v2030_v5  ;;  %v503_v5 = vsel %vm496_vm10, %v488_v36, %v489_v14  ;;  %vm1397_vm10 = vcmask 1046534  }
 0x190   :  { %1706 = vmatmul.mubr.msk.f32.gmra.mxu1 %vm667_vm1, %v507_v38 }
 0x191   :  { %1708 = vmatprep.mubr.msk.f32.mxu1 %vm667_vm1, %v551_v46 }
 0x194   :  { %1709 = vmatmul.mubr.msk.f32.gmra.mxu1 %vm667_vm1, %v505_v4 }
 0x195   :  { %1711 = vmatprep.mubr.msk.f32.mxu1 %vm667_vm1, %v553_v35 }
 0x198   :  { %1712 = vmatmul.mubr.msk.f32.gmra.mxu1 %vm667_vm1, %v503_v5 }
 0x199   :  { %1714 = vmatprep.mubr.msk.f32.mxu1 %vm667_vm1, %v555_v32 }
 0x19c   :  { %1715 = vmatmul.mubr.msk.f32.gmra.mxu1 %vm667_vm1, %v501_v41 }
 0x19d   :  { %1717 = vmatprep.mubr.msk.f32.mxu1 %vm667_vm1, %v557_v63 }
 0x1a0   :  { %1718 = vmatmul.mubr.msk.f32.gmra.mxu1 %vm667_vm1, %v499_v44 }
 0x1a1   :  { %1720 = vmatprep.mubr.msk.f32.mxu1 %vm667_vm1, %v559_v19  ;;  %v2400_v19 = vld [vmem:[%s2456_s3] ss:$0 sm:$0xff] }
 0x1a4   :  { %1721 = vmatmul.mubr.msk.f32.gmra.mxu1 %vm667_vm1, %v497_v59 }
 0x1a5   :  { %1752 = vmatprep.mubr.msk.f32.mxu1 %vm667_vm1, %v594_v6 }
 0x1a8   :  { %1753 = vmatmul.mubr.msk.f32.vlgmr.msra.gmra.mxu1 %vm667_vm1, %v657_v1 }
 0x213   :  { %v1669_v60 = vpop.f32.mrf.mxu1 }
 0x215   :  { %v782_v14 = vpop.f32.mrf.mxu1 }
 0x21b   :  { %v1672_v15 = vpop.f32.mrf.mxu1 }
 0x21d   :  { %v792_v23 = vpop.f32.mrf.mxu1 }
 0x21e   :  { %v1733_v43 = vpop.f32.mrf.mxu0 }
 0x220   :  { %v1173_v7 = vpop.f32.mrf.mxu0 }
 0x223   :  { %v1675_v25 = vpop.f32.mrf.mxu1 }
 0x225   :  { %v802_v32 = vpop.f32.mrf.mxu1 }
 0x226   :  { %v1736_v49 = vpop.f32.mrf.mxu0 }
 0x228   :  { %v1183_v51 = vpop.f32.mrf.mxu0 }
 0x22b   :  { %v1678_v33 = vpop.f32.mrf.mxu1 }
 0x22d   :  { %v812_v40 = vpop.f32.mrf.mxu1 }
 0x22e   :  { %v1739_v53 = vpop.f32.mrf.mxu0 }
 0x230   :  { %v1193_v55 = vpop.f32.mrf.mxu0 }
 0x233   :  { %v1681_v42 = vpop.f32.mrf.mxu1 }
 0x235   :  { %v2383_v45 = vpop.f32.mrf.mxu1 }
 0x236   :  { %v1742_v57 = vpop.f32.mrf.mxu0 }
 0x238   :  { %v1203_v9 = vpop.f32.mrf.mxu0 }
 0x23b   :  { %v2385_v47 = vpop.f32.mrf.mxu1 }
 0x23d   :  { %v2387_v48 = vpop.f32.mrf.mxu1 }
 0x23e   :  { %v1745_v1 = vpop.f32.mrf.mxu0 }
 0x240   :  { %v2389_v50 = vpop.f32.mrf.mxu1  ;;  %v1213_v28 = vpop.f32.mrf.mxu0 }
 0x242   :  { %v2391_v52 = vpop.f32.mrf.mxu1 }
 0x243   :  { %v1748_v4 = vpop.f32.mrf.mxu0 }
 0x244   :  { %v2393_v8 = vpop.f32.mrf.mxu1 }
 0x246   :  { %v2395_v54 = vpop.f32.mrf.mxu1 }
 0x248   :  { %v1701_v56 = vpop.f32.mrf.mxu1 }
 0x249   :  { %v981_v11 = vadd.f32 %v1701_v56, %v1669_v60 }
 0x24a   :  { %v975_v18 = vpop.f32.mrf.mxu1 }
 0x24b   :  { %v976_v58 = vadd.f32 %v975_v18, %v782_v14  ;;  %v1253_v27 = vadd.f32 %v1733_v43, %v981_v11 }
 0x24c   :  { %v1704_v61 = vpop.f32.mrf.mxu1 }
 0x24d   :  { %v991_v62 = vadd.f32 %v1704_v61, %v1672_v15  ;;  %v1252_v10 = vadd.f32 %v1173_v7, %v976_v58  ;;  %v1276_v36 = vadd.f32 %v2400_v19, %v1253_v27  ;;  %v1223_v7 = vpop.f32.mrf.mxu0 }
 0x24e   :  { %v985_v0 = vpop.f32.mrf.mxu1 }
 0x24f   :  { %v986_v63 = vadd.f32 %v985_v0, %v792_v23  ;;  %v1255_v12 = vadd.f32 %v1736_v49, %v991_v62  ;;  %v1275_v17 = vadd.f32 %v2400_v19, %v1252_v10  ;;  %v1292_v15 = vmax.f32 %v1276_v36, 0.0  ;;  %v1751_v10 = vpop.f32.mrf.mxu0 }
 0x250   :  { %v1707_v13 = vpop.f32.mrf.mxu1 }
 0x251   :  { %v1254_v16 = vadd.f32 %v1183_v51, %v986_v63  ;;  %v1001_v20 = vadd.f32 %v1707_v13, %v1675_v25  ;;  %v1278_v29 = vadd.f32 %v2400_v19, %v1255_v12  ;;  %v1291_v35 = vmax.f32 %v1275_v17, 0.0 }
 0x252   :  { %v995_v21 = vpop.f32.mrf.mxu1  ;;  %v1308_v58 = vsel %vm667_vm1, %v1292_v15, -inf }
 0x253   :  { %v1277_v22 = vadd.f32 %v2400_v19, %v1254_v16  ;;  %v996_v24 = vadd.f32 %v995_v21, %v802_v32  ;;  %v1257_v34 = vadd.f32 %v1739_v53, %v1001_v20  ;;  %v1294_v5 = vmax.f32 %v1278_v29, 0.0 }
 0x254   :  { %v1710_v30 = vpop.f32.mrf.mxu1  ;;  %v1307_v49 = vsel %vm667_vm1, %v1291_v35, -inf }
 0x255   :  { %v1256_v31 = vadd.f32 %v1193_v55, %v996_v24  ;;  %v1011_v2 = vadd.f32 %v1710_v30, %v1678_v33  ;;  %v1293_v26 = vmax.f32 %v1277_v22, 0.0  ;;  %v1280_v37 = vadd.f32 %v2400_v19, %v1257_v34 }
 0x256   :  { %v1005_v3 = vpop.f32.mrf.mxu1  ;;  %v1317_v51 = vsel %vm667_vm1, %v1294_v5, -inf  ;;  %v1309_v12 = vmax.f32 %v1307_v49, %v1308_v58 }
 0x257   :  { %v1279_v38 = vadd.f32 %v2400_v19, %v1256_v31  ;;  %v1259_v46 = vadd.f32 %v1742_v57, %v1011_v2  ;;  %v1006_v39 = vadd.f32 %v1005_v3, %v812_v40  ;;  %v1296_v41 = vmax.f32 %v1280_v37, 0.0  ;;  %v1233_v31 = vpop.f32.mrf.mxu0 }
 0x258   :  { %v1713_v44 = vpop.f32.mrf.mxu1  ;;  %v1316_v23 = vsel %vm667_vm1, %v1293_v26, -inf  ;;  %v1310_v2 = vrot.slane %v1309_v12, 4 }
 0x259   :  { %v1295_v59 = vmax.f32 %v1279_v38, 0.0  ;;  %v1282_v6 = vadd.f32 %v2400_v19, %v1259_v46  ;;  %v1258_v60 = vadd.f32 %v1203_v9, %v1006_v39  ;;  %v1021_v14 = vadd.f32 %v1713_v44, %v1681_v42 }
 0x25a   :  { %v1015_v25 = vpop.f32.mrf.mxu1  ;;  %v1326_v42 = vsel %vm667_vm1, %v1296_v41, -inf  ;;  %v1318_v61 = vmax.f32 %v1316_v23, %v1317_v51 }
 0x25b   :  { %v1325_v32 = vsel %vm667_vm1, %v1295_v59, -inf  ;;  %v1298_v33 = vmax.f32 %v1282_v6, 0.0  ;;  %v1281_v43 = vadd.f32 %v2400_v19, %v1258_v60  ;;  %v1261_v40 = vadd.f32 %v1745_v1, %v1021_v14 }
 0x25c   :  { %v1016_v53 = vadd.f32 %v1015_v25, %v2383_v45  ;;  %v1716_v55 = vpop.f32.mrf.mxu1  ;;  %v1327_v62 = vmax.f32 %v1325_v32, %v1326_v42  ;;  %v1319_v22 = vrot.slane %v1318_v61, 4  ;;  %v1311_v60 = vmax.f32 %v1309_v12, %v1310_v2 }
 0x25d   :  { %v1297_v56 = vmax.f32 %v1281_v43, 0.0  ;;  %v1284_v57 = vadd.f32 %v2400_v19, %v1261_v40  ;;  %v1031_v18 = vadd.f32 %v1716_v55, %v2385_v47  ;;  %v1335_v0 = vsel %vm667_vm1, %v1298_v33, -inf }
 0x25e   :  { %v1260_v9 = vadd.f32 %v1213_v28, %v1016_v53  ;;  %v1025_v11 = vpop.f32.mrf.mxu1  ;;  %v1328_v24 = vrot.slane %v1327_v62, 4 }
 0x25f   :  { %v1334_v63 = vsel %vm667_vm1, %v1297_v56, -inf  ;;  %v1263_v1 = vadd.f32 %v1748_v4, %v1031_v18  ;;  %v1026_v45 = vadd.f32 %v1025_v11, %v2387_v48  ;;  %v1300_v27 = vmax.f32 %v1284_v57, 0.0 }
 0x260   :  { %v1336_v13 = vmax.f32 %v1334_v63, %v1335_v0  ;;  %v1719_v16 = vpop.f32.mrf.mxu1  ;;  %v1283_v47 = vadd.f32 %v2400_v19, %v1260_v9  ;;  %v1320_v4 = vmax.f32 %v1318_v61, %v1319_v22  ;;  %v1312_v18 = vrot.slane %v1311_v60, 2 }
 0x261   :  { %v1286_v20 = vadd.f32 %v2400_v19, %v1263_v1  ;;  %v1262_v21 = vadd.f32 %v1223_v7, %v1026_v45  ;;  %v1041_v28 = vadd.f32 %v1719_v16, %v2389_v50  ;;  %v1344_v3 = vsel %vm667_vm1, %v1300_v27, -inf }
 0x262   :  { %v1035_v17 = vpop.f32.mrf.mxu1  ;;  %v1299_v29 = vmax.f32 %v1283_v47, 0.0  ;;  %v1337_v36 = vrot.slane %v1336_v13, 4  ;;  %v1329_v50 = vmax.f32 %v1327_v62, %v1328_v24  ;;  %v1321_v7 = vrot.slane %v1320_v4, 2 }
 0x263   :  { %v1302_v34 = vmax.f32 %v1286_v20, 0.0  ;;  %v1285_v30 = vadd.f32 %v2400_v19, %v1262_v21  ;;  %v1036_v48 = vadd.f32 %v1035_v17, %v2391_v52  ;;  %v1265_v26 = vadd.f32 %v1751_v10, %v1041_v28 }
 0x264   :  { %v1722_v37 = vpop.f32.mrf.mxu1  ;;  %v1343_v38 = vsel %vm667_vm1, %v1299_v29, -inf  ;;  %v1338_v14 = vmax.f32 %v1336_v13, %v1337_v36  ;;  %v1330_v49 = vrot.slane %v1329_v50, 2  ;;  %v1322_v0 = vmax.f32 %v1320_v4, %v1321_v7 }
 0x265   :  { %v1301_v46 = vmax.f32 %v1285_v30, 0.0  ;;  %v1264_v39 = vadd.f32 %v1233_v31, %v1036_v48  ;;  %v1345_v35 = vmax.f32 %v1343_v38, %v1344_v3  ;;  %v1288_v5 = vadd.f32 %v2400_v19, %v1265_v26 }
 0x266   :  { %v1045_v41 = vpop.f32.mrf.mxu1  ;;  %v1353_v44 = vsel %vm667_vm1, %v1302_v34, -inf  ;;  %v1051_v6 = vadd.f32 %v1722_v37, %v2393_v8  ;;  %v1339_v58 = vrot.slane %v1338_v14, 2  ;;  %v1331_v45 = vmax.f32 %v1329_v50, %v1330_v49 }
 0x267   :  { %v1352_v52 = vsel %vm667_vm1, %v1301_v46, -inf  ;;  %v1287_v59 = vadd.f32 %v2400_v19, %v1264_v39  ;;  %v1346_v15 = vrot.slane %v1345_v35, 4  ;;  %v1304_v32 = vmax.f32 %v1288_v5, 0.0 }
 0x268   :  { %v1354_v23 = vmax.f32 %v1352_v52, %v1353_v44  ;;  %v1754_v25 = vpop.f32.mrf.mxu1  ;;  %v1046_v43 = vadd.f32 %v1045_v41, %v2395_v54  ;;  %v1313_v12 = vmax.f32 %v1311_v60, %v1312_v18  ;;  %v1340_v13 = vmax.f32 %v1338_v14, %v1339_v58 }
 0x269   :  { %v1303_v33 = vmax.f32 %v1287_v59, 0.0  ;;  %v1267_v40 = vadd.f32 %v1754_v25, %v1051_v6  ;;  %v1347_v51 = vmax.f32 %v1345_v35, %v1346_v15  ;;  %v1362_v42 = vsel %vm667_vm1, %v1304_v32, -inf }
 0x26a   :  { %v1355_v53 = vrot.slane %v1354_v23, 4  ;;  %v1243_v55 = vpop.f32.mrf.mxu1  ;;  %v1323_v21 = vrot.slane %v1322_v0, 1  ;;  %v1332_v17 = vrot.slane %v1331_v45, 1  ;;  %v1314_v29 = vrot.slane %v1313_v12, 1 }
 0x26b   :  { %v1361_v56 = vsel %vm667_vm1, %v1303_v33, -inf  ;;  %v1290_v8 = vadd.f32 %v2400_v19, %v1267_v40  ;;  %v1266_v57 = vadd.f32 %v1243_v55, %v1046_v43  ;;  %v1348_v9 = vrot.slane %v1347_v51, 2 }
 0x26c   :  { %v1356_v61 = vmax.f32 %v1354_v23, %v1355_v53  ;;  %v1363_v62 = vmax.f32 %v1361_v56, %v1362_v42  ;;  %v1324_v31 = vmax.f32 %v1322_v0, %v1323_v21  ;;  %v1333_v26 = vmax.f32 %v1331_v45, %v1332_v17 }
 0x26d   :  { %v1306_v11 = vmax.f32 %v1290_v8, 0.0  ;;  %v1289_v54 = vadd.f32 %v2400_v19, %v1266_v57  ;;  %v1349_v27 = vmax.f32 %v1347_v51, %v1348_v9  ;;  %v1341_v19 = vrot.slane %v1340_v13, 1 }
 0x26e   :  { %v1357_v63 = vrot.slane %v1356_v61, 2  ;;  %v1364_v1 = vrot.slane %v1363_v62, 4  ;;  %v1315_v3 = vmax.f32 %v1313_v12, %v1314_v29 }
 0x26f   :  { %v1305_v10 = vmax.f32 %v1289_v54, 0.0  ;;  %v1371_v47 = vsel %vm667_vm1, %v1306_v11, -inf  ;;  %v1350_v48 = vrot.slane %v1349_v27, 1  ;;  %v1342_v38 = vmax.f32 %v1340_v13, %v1341_v19 }
 0x270   :  { %v1365_v16 = vmax.f32 %v1363_v62, %v1364_v1  ;;  %v1358_v22 = vmax.f32 %v1356_v61, %v1357_v63  ;;  %v1388_v35 = vsel %vm1387_vm2, %v1324_v31, %v1315_v3 }
 0x271   :  { %v1370_v20 = vsel %vm667_vm1, %v1305_v10, -inf  ;;  %vm1389_vm1 = vcmask 1042434   ;;  %v1351_v39 = vmax.f32 %v1349_v27, %v1350_v48 }
 0x272   :  { %v1366_v24 = vrot.slane %v1365_v16, 2  ;;  %v1372_v28 = vmax.f32 %v1370_v20, %v1371_v47  ;;  %v1359_v36 = vrot.slane %v1358_v22, 1  ;;  %v1390_v41 = vsel %vm1389_vm1, %v1333_v26, %v1388_v35 }
 0x273   :  { %v1392_v52 = vsel %vm1391_vm7, %v1342_v38, %v1390_v41 }
 0x274   :  { %v1373_v34 = vrot.slane %v1372_v28, 4  ;;  %v1367_v30 = vmax.f32 %v1365_v16, %v1366_v24  ;;  %v1360_v4 = vmax.f32 %v1358_v22, %v1359_v36  ;;  %v1394_v59 = vsel %vm1393_vm8, %v1351_v39, %v1392_v52 }
 0x276   :  { %v1374_v2 = vmax.f32 %v1372_v28, %v1373_v34  ;;  %v1368_v37 = vrot.slane %v1367_v30, 1  ;;  %v1396_v60 = vsel %vm1395_vm9, %v1360_v4, %v1394_v59 }
 0x278   :  { %v1375_v46 = vrot.slane %v1374_v2, 2  ;;  %v1369_v5 = vmax.f32 %v1367_v30, %v1368_v37 }
 0x27a   :  { %v1376_v50 = vmax.f32 %v1374_v2, %v1375_v46  ;;  %v1398_v14 = vsel %vm1397_vm10, %v1369_v5, %v1396_v60 }
 0x27c   :  { %v1377_v44 = vrot.slane %v1376_v50, 1 }
 0x27e   :  { %v1378_v6 = vmax.f32 %v1376_v50, %v1377_v44 }
 0x280   :  { %v1400_v15 = vsel %vm1399_vm11, %v1378_v6, %v1398_v14 }
 0x281   :  { %1402 = vxpose.xlu0.b32.start.end [1/1] (short) (narrow) %v1400_v15, 32 }
 0x2fd   :  { %v1418_v23 = vpop.trf.xlu0 }
 0x2fe   :  { %1435 = vst.msk [vmem:[%s2457_s4] sm:$0xff] %vm1434_vm12, %v1418_v23 }
 0x301   :  { %v1419_v25 = vpop.trf.xlu0 }
 0x302   :  { %1436 = vst.msk [vmem:[%s2457_s4 + $0x8] sm:$0xff] %vm1434_vm12, %v1419_v25 }
 0x305   :  { %v1420_v32 = vpop.trf.xlu0 }
 0x306   :  { %1437 = vst.msk [vmem:[%s2457_s4 + $0x10] sm:$0xff] %vm1434_vm12, %v1420_v32 }
 0x309   :  { %v1421_v33 = vpop.trf.xlu0 }
 0x30a   :  { %1438 = vst.msk [vmem:[%s2457_s4 + $0x18] sm:$0xff] %vm1434_vm12, %v1421_v33 }

</bundles_post_ra>
